<compile_context>
chip_gen: v7x
topology: tpu7x:2x2x1
jax: 0.10.0
libtpu: 0.0.40
codegen_flags: <defaults>
</compile_context>

<pallas_src>
import math

import jax
import jax.numpy as jnp
from jax import lax
from jax.experimental import pallas as pl
from jax.experimental.pallas import tpu as pltpu


# ----------------------------------------------------------------------------
# helpers
# ----------------------------------------------------------------------------
def _round_up(v, m):
    return (v + m - 1) // m * m


def _largest_divisor_leq(n, cap):
    cap = max(1, min(int(n), int(cap)))
    for d in range(cap, 0, -1):
        if n % d == 0:
            return d
    return 1


def _vmem_budget_bytes():
    """Per-generation scoped-VMEM budget with headroom.

    v5e/v6e: 128 MiB physical -> ~96 MiB budget.  v7x: 64 MiB -> ~48 MiB.
    Falls back to the conservative 48 MiB if the query is unavailable.
    """
    cap = None
    try:
        cap = getattr(pltpu.get_tpu_info(), "vmem_capacity_bytes", None)
    except Exception:
        cap = None
    if not cap:
        cap = 64 * 1024 * 1024
    return int(max(32 * 1024 * 1024, min(cap * 3 // 4, 96 * 1024 * 1024)))


# ----------------------------------------------------------------------------
# support = x @ W  (computed exactly once; removes the old per-row-tile
# recompute in the Din >= Dout path)
# ----------------------------------------------------------------------------
def _support_kernel(x_ref, w_ref, o_ref):
    # x_ref: (Bb, tn, Din), w_ref: (Din, Dout), o_ref: (Bb, tn, Dout)
    bb = x_ref.shape[0]
    w = jnp.broadcast_to(w_ref[...], (bb,) + w_ref.shape)
    o_ref[...] = jnp.einsum(
        "bnd,bde->bne", x_ref[...], w, preferred_element_type=jnp.float32
    ).astype(o_ref.dtype)


def _feature_matmul(x, w, *, batch_tile, budget):
    B, N, Din = x.shape
    Dout = w.shape[1]
    itemsize = jnp.dtype(x.dtype).itemsize

    tn = N if N <= 512 else 512
    Bb = _largest_divisor_leq(B, batch_tile)

    def bytes_needed(bb):
        return (2 * bb * tn * (Din + Dout) + 2 * Din * Dout) * itemsize

    while Bb > 1 and bytes_needed(Bb) > budget:
        Bb = _largest_divisor_leq(B, Bb - 1)

    grid = (B // Bb, pl.cdiv(N, tn))
    cost = pl.CostEstimate(
        flops=2 * B * N * Din * Dout,
        transcendentals=0,
        bytes_accessed=(x.size + w.size + B * N * Dout) * itemsize,
    )
    return pl.pallas_call(
        _support_kernel,
        out_shape=jax.ShapeDtypeStruct((B, N, Dout), x.dtype),
        grid_spec=pltpu.PrefetchScalarGridSpec(
            num_scalar_prefetch=0,
            grid=grid,
            in_specs=[
                pl.BlockSpec((Bb, tn, Din), lambda b, i: (b, i, 0)),
                pl.BlockSpec((Din, Dout), lambda b, i: (0, 0)),
            ],
            out_specs=pl.BlockSpec((Bb, tn, Dout), lambda b, i: (b, i, 0)),
        ),
        compiler_params=pltpu.CompilerParams(
            dimension_semantics=("parallel", "parallel"),
            vmem_limit_bytes=budget,
        ),
        cost_estimate=cost,
    )(x, w)


# ----------------------------------------------------------------------------
# Mode A: row/batch-tiled main kernel (feature block resident, no reduction,
# no scratch accumulator, no padding of adj).
# ----------------------------------------------------------------------------
def _make_rowtile_kernel(apply_w):
    if apply_w:

        def kernel(adj_ref, feat_ref, w_ref, o_ref):
            # adj_ref: (Bb, tn, N), feat_ref: (Bb, N, Din), w_ref: (Din, Dout)
            t = jnp.einsum(
                "bik,bkd->bid", adj_ref[...], feat_ref[...],
                preferred_element_type=jnp.float32,
            )
            # Keep the trailing matmul in f32 even for bf16 compute_dtype.
            w = jnp.broadcast_to(
                w_ref[...].astype(jnp.float32),
                (adj_ref.shape[0],) + w_ref.shape,
            )
            o_ref[...] = jnp.einsum(
                "bid,bde->bie", t, w, preferred_element_type=jnp.float32
            ).astype(o_ref.dtype)

    else:

        def kernel(adj_ref, feat_ref, o_ref):
            o_ref[...] = jnp.einsum(
                "bik,bkd->bid", adj_ref[...], feat_ref[...],
                preferred_element_type=jnp.float32,
            ).astype(o_ref.dtype)

    return kernel


def _gcn_rowtile_call(adj, feat, w, apply_w, out_dtype, *, node_tile,
                      batch_tile, budget):
    """Returns the output array, or None if the mode does not fit VMEM."""
    B, N, _ = adj.shape
    Dfeat = feat.shape[-1]
    Dout = w.shape[1] if apply_w else Dfeat
    itemsize = jnp.dtype(adj.dtype).itemsize
    out_itemsize = jnp.dtype(out_dtype).itemsize

    tn = N if N <= node_tile else max(128, (node_tile // 128) * 128)
    Bb = _largest_divisor_leq(B, batch_tile)

    def bytes_needed(bb, t):
        b = 2 * bb * t * N * itemsize            # adj row tile (double buffered)
        b += 2 * bb * N * Dfeat * itemsize       # resident feature block
        b += 2 * bb * t * Dout * out_itemsize    # output tile
        if apply_w:
            b += 2 * w.size * itemsize           # resident weight
            b += bb * t * Dfeat * 4              # f32 intermediate (adj @ feat)
        return b

    while Bb > 1 and bytes_needed(Bb, tn) > budget:
        Bb = _largest_divisor_leq(B, Bb - 1)
    if bytes_needed(Bb, tn) > budget:
        return None  # fall back to the k-tiled mode

    # Keep at least 2 parallel tiles so both v7x TensorCores get work.
    if (B // Bb) * pl.cdiv(N, tn) < 2 and N >= 256:
        tn = _round_up(pl.cdiv(N, 2), 128)

    grid = (B // Bb, pl.cdiv(N, tn))
    n_row_tiles = pl.cdiv(N, tn)

    in_specs = [
        pl.BlockSpec((Bb, tn, N), lambda b, i: (b, i, 0)),       # adj row tile
        pl.BlockSpec((Bb, N, Dfeat), lambda b, i: (b, 0, 0)),    # features
    ]
    operands = [adj, feat]
    if apply_w:
        in_specs.append(
            pl.BlockSpec((w.shape[0], w.shape[1]), lambda b, i: (0, 0))
        )
        operands.append(w)

    cost = pl.CostEstimate(
        flops=2 * B * N * N * Dfeat
        + (2 * B * N * Dfeat * Dout if apply_w else 0),
        transcendentals=0,
        bytes_accessed=adj.size * itemsize
        + feat.size * itemsize * n_row_tiles
        + (w.size * itemsize if apply_w else 0)
        + B * N * Dout * out_itemsize,
    )

    return pl.pallas_call(
        _make_rowtile_kernel(apply_w),
        out_shape=jax.ShapeDtypeStruct((B, N, Dout), out_dtype),
        grid_spec=pltpu.PrefetchScalarGridSpec(
            num_scalar_prefetch=0,
            grid=grid,
            in_specs=in_specs,
            out_specs=pl.BlockSpec((Bb, tn, Dout), lambda b, i: (b, i, 0)),
        ),
        compiler_params=pltpu.CompilerParams(
            dimension_semantics=("parallel", "parallel"),
            vmem_limit_bytes=budget,
        ),
        cost_estimate=cost,
    )(*operands)


# ----------------------------------------------------------------------------
# Mode B: k-tiled fallback for graphs whose resident feature block does not
# fit VMEM.  Ragged contraction tail is masked in-kernel (no jnp.pad of adj).
# ----------------------------------------------------------------------------
def _make_ktiled_kernel(apply_w, tn, n_valid, ragged):
    def masked_blocks(adj_ref, feat_ref, k):
        adj_blk = adj_ref[...]
        feat_blk = feat_ref[...]
        if ragged:  # static: only emitted when N % tn != 0
            limit = n_valid - k * tn
            col = lax.broadcasted_iota(jnp.int32, (1, tn, tn), 2)
            row = lax.broadcasted_iota(
                jnp.int32, (1, tn, feat_blk.shape[-1]), 1
            )
            adj_blk = jnp.where(col < limit, adj_blk, 0)
            feat_blk = jnp.where(row < limit, feat_blk, 0)
        return adj_blk, feat_blk

    if apply_w:

        def kernel(adj_ref, feat_ref, w_ref, o_ref, acc_ref):
            k = pl.program_id(2)

            @pl.when(k == 0)
            def _():
                acc_ref[...] = jnp.zeros_like(acc_ref)

            adj_blk, feat_blk = masked_blocks(adj_ref, feat_ref, k)
            acc_ref[...] += jnp.einsum(
                "bik,bkd->bid", adj_blk, feat_blk,
                preferred_element_type=jnp.float32,
            )

            @pl.when(k == pl.num_programs(2) - 1)
            def _():
                w = jnp.broadcast_to(
                    w_ref[...].astype(jnp.float32),
                    (acc_ref.shape[0],) + w_ref.shape,
                )
                o_ref[...] = jnp.einsum(
                    "bid,bde->bie", acc_ref[...], w,
                    preferred_element_type=jnp.float32,
                ).astype(o_ref.dtype)

    else:

        def kernel(adj_ref, feat_ref, o_ref):
            # Accumulate directly into the (resident, f32) output block:
            # no scratch buffer needed when no trailing weight matmul.
            k = pl.program_id(2)

            @pl.when(k == 0)
            def _():
                o_ref[...] = jnp.zeros_like(o_ref)

            adj_blk, feat_blk = masked_blocks(adj_ref, feat_ref, k)
            o_ref[...] += jnp.einsum(
                "bik,bkd->bid", adj_blk, feat_blk,
                preferred_element_type=jnp.float32,
            )

    return kernel


def _gcn_ktiled_call(adj, feat, w, apply_w, out_dtype, *, node_tile,
                     batch_tile, budget):
    B, N, _ = adj.shape
    Dfeat = feat.shape[-1]
    Dout = w.shape[1] if apply_w else Dfeat
    itemsize = jnp.dtype(adj.dtype).itemsize

    # The no-weight variant accumulates straight into the output block in f32.
    ker_out_dtype = out_dtype if apply_w else jnp.float32
    ker_out_itemsize = jnp.dtype(ker_out_dtype).itemsize

    tn = max(128, (node_tile // 128) * 128)
    tn = min(tn, _round_up(N, 128))
    Bb = _largest_divisor_leq(B, batch_tile)

    def bytes_needed(bb, t):
        b = 2 * bb * t * t * itemsize            # adj tile
        b += 2 * bb * t * Dfeat * itemsize       # feature k-tile
        b += 2 * bb * t * Dout * ker_out_itemsize
        if apply_w:
            b += 2 * w.size * itemsize
            b += bb * t * Dfeat * 4              # f32 scratch accumulator
        return b

    while Bb > 1 and bytes_needed(Bb, tn) > budget:
        Bb = _largest_divisor_leq(B, Bb - 1)
    while tn > 128 and bytes_needed(Bb, tn) > budget:
        tn -= 128

    ragged = (N % tn) != 0
    n_i = pl.cdiv(N, tn)
    grid = (B // Bb, n_i, pl.cdiv(N, tn))

    in_specs = [
        pl.BlockSpec((Bb, tn, tn), lambda b, i, k: (b, i, k)),
        pl.BlockSpec((Bb, tn, Dfeat), lambda b, i, k: (b, k, 0)),
    ]
    operands = [adj, feat]
    scratch = []
    if apply_w:
        in_specs.append(
            pl.BlockSpec((w.shape[0], w.shape[1]), lambda b, i, k: (0, 0))
        )
        operands.append(w)
        scratch = [pltpu.VMEM((Bb, tn, Dfeat), jnp.float32)]

    cost = pl.CostEstimate(
        flops=2 * B * N * N * Dfeat
        + (2 * B * N * Dfeat * Dout if apply_w else 0),
        transcendentals=0,
        bytes_accessed=adj.size * itemsize
        + feat.size * itemsize * n_i
        + (w.size * itemsize if apply_w else 0)
        + B * N * Dout * ker_out_itemsize,
    )

    out = pl.pallas_call(
        _make_ktiled_kernel(apply_w, tn, N, ragged),
        out_shape=jax.ShapeDtypeStruct((B, N, Dout), ker_out_dtype),
        grid_spec=pltpu.PrefetchScalarGridSpec(
            num_scalar_prefetch=0,
            grid=grid,
            in_specs=in_specs,
            out_specs=pl.BlockSpec((Bb, tn, Dout), lambda b, i, k: (b, i, 0)),
            scratch_shapes=scratch,
        ),
        compiler_params=pltpu.CompilerParams(
            dimension_semantics=("parallel", "parallel", "arbitrary"),
            vmem_limit_bytes=budget,
        ),
        cost_estimate=cost,
    )(*operands)
    return out.astype(out_dtype)


# ----------------------------------------------------------------------------
# public entry point
# ----------------------------------------------------------------------------
def graph_convolution(x, adj, weight, *, node_tile=512, batch_tile=8,
                      compute_dtype=None, force_k_tiled=False,
                      vmem_budget_bytes=None):
    """GCN forward: adj @ (x @ weight).

    x:      (..., N, Din)
    adj:    (..., N, N)    (same leading batch dims as x)
    weight: (Din, Dout)
    returns (..., N, Dout) in x.dtype.

    compute_dtype: optionally cast x/adj/weight (e.g. jnp.bfloat16 on v6e/v7x)
    to halve HBM traffic of the mem-bound adj stream; accumulation and the
    trailing (.) @ W matmul stay f32 inside the kernels.
    """
    *lead, N, Din = x.shape
    assert tuple(adj.shape[:-2]) == tuple(lead) and adj.shape[-2:] == (N, N)
    assert weight.shape[0] == Din
    Dout = weight.shape[1]
    out_dtype = x.dtype

    B = 1
    for d in lead:
        B *= d

    cdtype = jnp.dtype(compute_dtype) if compute_dtype is not None else jnp.dtype(x.dtype)
    xf = x.reshape(B, N, Din).astype(cdtype)
    adjf = adj.reshape(B, N, N).astype(cdtype)
    wf = weight.astype(cdtype)

    budget = int(vmem_budget_bytes) if vmem_budget_bytes else _vmem_budget_bytes()

    # Matmul-order dispatch: adj @ (x @ W) == (adj @ x) @ W — use the narrower
    # feature width on the dominant N^2 contraction.
    xw_first = Din >= Dout
    if xw_first:
        feat = _feature_matmul(xf, wf, batch_tile=batch_tile, budget=budget)
        apply_w = False
    else:
        feat = xf
        apply_w = True

    out = None
    if not force_k_tiled:
        out = _gcn_rowtile_call(
            adjf, feat, wf if apply_w else None, apply_w, out_dtype,
            node_tile=node_tile, batch_tile=batch_tile, budget=budget)
    if out is None:
        out = _gcn_ktiled_call(
            adjf, feat, wf if apply_w else None, apply_w, out_dtype,
            node_tile=node_tile, batch_tile=batch_tile, budget=budget)

    return out.reshape(*lead, N, Dout)


def xavier_uniform(key, fan_in, fan_out, gain):
    # Matches torch.nn.init.xavier_uniform_ semantics.
    bound = gain * math.sqrt(6.0 / (fan_in + fan_out))
    return jax.random.uniform(
        key, (fan_in, fan_out), dtype=jnp.float32, minval=-bound, maxval=bound
    )


if __name__ == "__main__":
    # Shapes implied by the module spec: x = torch.randn(2, 5, 90, 39),
    # adj is the per-graph (N, N) adjacency with the same leading dims.
    B0, B1, N, Din = 2, 5, 90, 39
    Dout = 64

    key = jax.random.PRNGKey(0)
    kx, kadj, kw, kw2, kx2, kadj2, kw3, kw4 = jax.random.split(key, 8)

    x = jax.random.normal(kx, (B0, B1, N, Din), dtype=jnp.float32)
    adj = jax.random.normal(kadj, (B0, B1, N, N), dtype=jnp.float32)

    weight = xavier_uniform(kw, Din, Dout, gain=math.sqrt(2.0))
    # self.bias is declared in the PyTorch __init__ but never used in forward.

    ref = jnp.matmul(adj, jnp.matmul(x, weight))

    # Din < Dout  ->  (adj @ x) @ W, batch/row-tiled main kernel.
    out = jax.block_until_ready(graph_convolution(x, adj, weight))
    assert out.shape == (B0, B1, N, Dout)
    assert jnp.allclose(out, ref, atol=1e-2, rtol=1e-3), float(
        jnp.max(jnp.abs(out - ref))
    )

    # Din >= Dout ->  support = x @ W computed once, then adj @ support.
    Dout2 = 16
    weight2 = xavier_uniform(kw2, Din, Dout2, gain=math.sqrt(2.0))
    out2 = jax.block_until_ready(graph_convolution(x, adj, weight2))
    ref2 = jnp.matmul(adj, jnp.matmul(x, weight2))
    assert out2.shape == (B0, B1, N, Dout2)
    assert jnp.allclose(out2, ref2, atol=1e-2, rtol=1e-3), float(
        jnp.max(jnp.abs(out2 - ref2))
    )

    # bf16 compute (halves HBM traffic of the dominant adj stream on v6e/v7x);
    # accumulation stays f32 in-kernel, so the error stays small.
    out_bf = jax.block_until_ready(
        graph_convolution(x, adj, weight, compute_dtype=jnp.bfloat16)
    )
    assert float(jnp.max(jnp.abs(out_bf - ref))) < 2.0

    # k-tiled fallback (large-N path), forced at a small shape so the ragged
    # contraction-tail masking and the reduction pipeline are exercised.
    B2, N2 = 3, 200
    x_a = jax.random.normal(kx2, (B2, N2, 24), dtype=jnp.float32)
    adj2 = jax.random.normal(kadj2, (B2, N2, N2), dtype=jnp.float32)

    w_a = xavier_uniform(kw3, 24, 40, gain=math.sqrt(2.0))  # Din < Dout path
    out_a = jax.block_until_ready(
        graph_convolution(x_a, adj2, w_a, node_tile=128, force_k_tiled=True)
    )
    ref_a = jnp.matmul(adj2, jnp.matmul(x_a, w_a))
    assert jnp.allclose(out_a, ref_a, atol=1e-2, rtol=1e-3), float(
        jnp.max(jnp.abs(out_a - ref_a))
    )

    w_b = xavier_uniform(kw4, 24, 16, gain=math.sqrt(2.0))  # Din >= Dout path
    out_b = jax.block_until_ready(
        graph_convolution(x_a, adj2, w_b, node_tile=128, force_k_tiled=True)
    )
    ref_b = jnp.matmul(adj2, jnp.matmul(x_a, w_b))
    assert jnp.allclose(out_b, ref_b, atol=1e-2, rtol=1e-3), float(
        jnp.max(jnp.abs(out_b - ref_b))
    )

    print("KERNEL_OK")
</pallas_src>

<mosaic_0001>
module attributes {stable_mosaic.version = 11 : i64} {
  func.func @kernel(%arg0: i32, %arg1: i32, %arg2: memref<5x90x90xf32, #tpu.memory_space<vmem>>, %arg3: memref<5x90x39xf32, #tpu.memory_space<vmem>>, %arg4: memref<39x64xf32, #tpu.memory_space<vmem>>, %arg5: memref<5x90x64xf32, #tpu.memory_space<vmem>>) attributes {dimension_semantics = [#tpu.dimension_semantics<parallel>, #tpu.dimension_semantics<parallel>], iteration_bounds = array<i64: 2, 1>, scalar_prefetch = 0 : i64, scratch_operands = 0 : i64, tpu.core_type = #tpu.core_type<tc>, window_params = [{transform_indices = @transform_0, window_bounds = array<i64: 5, 90, 90>}, {transform_indices = @transform_1, window_bounds = array<i64: 5, 90, 39>}, {pipeline_mode = #tpu.pipeline_mode<synchronous>, transform_indices = @transform_2, window_bounds = array<i64: 39, 64>}, {transform_indices = @transform_3, window_bounds = array<i64: 5, 90, 64>}]} {
    %c0 = arith.constant 0 : index
    %c0_0 = arith.constant 0 : index
    %c0_1 = arith.constant 0 : index
    %0 = vector.load %arg2[%c0, %c0_0, %c0_1] : memref<5x90x90xf32, #tpu.memory_space<vmem>>, vector<5x90x90xf32>
    %c0_2 = arith.constant 0 : index
    %c0_3 = arith.constant 0 : index
    %c0_4 = arith.constant 0 : index
    %1 = vector.load %arg3[%c0_2, %c0_3, %c0_4] : memref<5x90x39xf32, #tpu.memory_space<vmem>>, vector<5x90x39xf32>
    "tpu.trace_start"() <{level = 10 : i32, message = "bik,bkd->bid"}> : () -> ()
    %cst = arith.constant dense<0.000000e+00> : vector<5x90x39xf32>
    %2 = tpu.matmul %0, %1, %cst {dimension_numbers = #tpu.dot_dimension_numbers<[2], [1], [1], [2], [0, 0, 0, 1, 1, 2], [0], [0]>} : vector<5x90x90xf32>, vector<5x90x39xf32>, vector<5x90x39xf32> -> vector<5x90x39xf32>
    "tpu.trace_stop"() : () -> ()
    %c0_5 = arith.constant 0 : index
    %c0_6 = arith.constant 0 : index
    %3 = vector.load %arg4[%c0_5, %c0_6] : memref<39x64xf32, #tpu.memory_space<vmem>>, vector<39x64xf32>
    %4 = vector.shape_cast %3 : vector<39x64xf32> to vector<1x39x64xf32>
    %5 = vector.broadcast %4 : vector<1x39x64xf32> to vector<5x39x64xf32>
    "tpu.trace_start"() <{level = 10 : i32, message = "bid,bde->bie"}> : () -> ()
    %cst_7 = arith.constant dense<0.000000e+00> : vector<5x90x64xf32>
    %6 = tpu.matmul %2, %5, %cst_7 {dimension_numbers = #tpu.dot_dimension_numbers<[2], [1], [1], [2], [0, 0, 0, 1, 1, 2], [0], [0]>} : vector<5x90x39xf32>, vector<5x39x64xf32>, vector<5x90x64xf32> -> vector<5x90x64xf32>
    "tpu.trace_stop"() : () -> ()
    %c0_8 = arith.constant 0 : index
    %c0_9 = arith.constant 0 : index
    %c0_10 = arith.constant 0 : index
    %7 = vector.load %arg5[%c0_8, %c0_9, %c0_10] : memref<5x90x64xf32, #tpu.memory_space<vmem>>, vector<5x90x64xf32>
    tpu.vector_store %arg5[%c0_8, %c0_9, %c0_10], %6 {strides = array<i32>} : memref<5x90x64xf32, #tpu.memory_space<vmem>>, vector<5x90x64xf32>,
    return
  }
  func.func @transform_0(%arg0: i32, %arg1: i32) -> (i32, i32, i32) {
    %c0_i32 = arith.constant 0 : i32
    %c0_i32_0 = arith.constant 0 : i32
    return %arg0, %arg1, %c0_i32 : i32, i32, i32
  }
  func.func @transform_1(%arg0: i32, %arg1: i32) -> (i32, i32, i32) {
    %c0_i32 = arith.constant 0 : i32
    %c0_i32_0 = arith.constant 0 : i32
    %c0_i32_1 = arith.constant 0 : i32
    return %arg0, %c0_i32, %c0_i32_0 : i32, i32, i32
  }
  func.func @transform_2(%arg0: i32, %arg1: i32) -> (i32, i32) {
    %c0_i32 = arith.constant 0 : i32
    %c0_i32_0 = arith.constant 0 : i32
    %c0_i32_1 = arith.constant 0 : i32
    return %c0_i32, %c0_i32_0 : i32, i32
  }
  func.func @transform_3(%arg0: i32, %arg1: i32) -> (i32, i32, i32) {
    %c0_i32 = arith.constant 0 : i32
    %c0_i32_0 = arith.constant 0 : i32
    return %arg0, %arg1, %c0_i32 : i32, i32, i32
  }
}

</mosaic_0001>

<bundles_post_ra>
// kernel: tpu_custom_call.1
= control target key start
LH: loop header
LB: loop body
LE: loop exit
PB: predicated region body
PF: predicated region fallthrough
CT: control target
= control target key end

     0   :  { %s3100_s12 = smov 0   ;;  %s3102_s13 = smov 0   ;;  %s3592_s0 = inlined_call_operand.vmem [shape: f32[10,90,90], index: 0, kind: input, shape index: {}]   ;;  %s3593_s1 = inlined_call_operand.vmem [shape: f32[10,90,39], index: 1, kind: input, shape index: {}]   ;;  %s3594_s2 = inlined_call_operand.vmem [shape: f32[39,64], index: 2, kind: input, shape index: {}]   ;;  %s3595_s3 = inlined_call_operand.vmem [shape: f32[10,90,64], index: 3, kind: output, shape index: {}]  }
   0x1   :  { %s3104_s14 = smov 0  }
   0x2 LB: > { %s25_s15 = sadd.s32 1, %s3073_s13  ;;  %p2168_p0 = scmp.ge.s32.totalorder %s3077_s14, 1  ;;  %s3077_s14 = sphi %s3104_s14, %s13_s14   ;;  %s3073_s13 = sphi %s3102_s13, %s3599_s13   ;;  %s3069_s12 = sphi %s3100_s12, %s3598_s12  }
   0x3   : > { %p27_p1 = scmp.ge.s32.totalorder %s25_s15, 2  ;;  %p172_p2 = scmp.lt.s32.totalorder %s3077_s14, 3 }
   0x5   : > { %s3601_s15 = smov (%p27_p1, %s25_s15), 0  ;;  %p173_p3 = pnand %p2168_p0, %p172_p2 }
   0x6   : > { %s212_s16 = smul.u32 (!%p173_p3), 5, %s3069_s12  ;;  %vm363_vm0 = vcmask (!%p173_p3), 736256   ;;  %vm400_vm1 = vcmask (!%p173_p3), 1041408   ;;  %vm3079_vm2 = vmmov (!%p173_p3), 1   ;;  %vm1227_vm4 = vcmask (!%p173_p3), 1046528  }
   0x7   : > { %176 = sbr.rel (%p173_p3) target bundleno = 541 (0x21d), region = 32  ;;  %vm3157_vm3 = vmpackc.low (!%p173_p3), %vm400_vm1, %vm3079_vm2  ;;  %vm1190_vm5 = vcmask (!%p173_p3), 318464   ;;  %vm2000_vm6 = vcmask (!%p173_p3), 523264   ;;  %vm2012_vm7 = vcmask (!%p173_p3), 517120  }
   0x8   : > { %p214_p4 = scmp.lt.s32.totalorder (!%p173_p3), %s212_s16, 9 }
   0xe   : > { %s3603_s16 = smov (!%p214_p4, %s212_s16), 9 }
   0xf   : > { %s3118_s17 = smul.u32 96, %s3603_s16 }
  0x11   : > { %s3124_s20 = scalar_lea.vmem %s3593_s1, %s3118_s17  ;;  %s3134_s23 = scalar_lea.vmem %s3592_s0, %s3118_s17 }
  0x12   : > { %v303_v0 = vld [vmem:[%s3124_s20] sm:$0xff]  ;;  %v304_v1 = vld [vmem:[%s3124_s20 + $0x8] sm:$0xff]  ;;  %v305_v2 = vld [vmem:[%s3124_s20 + $0x10] sm:$0xff]  ;;  %s3461_s9 = scalar_lea.vmem %s3595_s3, %s3118_s17 }
  0x13   : > { %v2859_v3 = vpack.c.bf16 %v304_v1, %v303_v0  ;;  %v306_v4 = vld [vmem:[%s3124_s20 + $0x18] sm:$0xff]  ;;  %v307_v6 = vld [vmem:[%s3124_s20 + $0x20] sm:$0xff]  ;;  %v308_v7 = vld [vmem:[%s3124_s20 + $0x28] sm:$0xff] }
  0x14   : > { %v2863_v5 = vpack.c.bf16 %v306_v4, %v305_v2  ;;  %v315_v8 = vld [vmem:[%s3124_s20 + $0x60] sm:$0xff]  ;;  %v316_v9 = vld [vmem:[%s3124_s20 + $0x68] sm:$0xff]  ;;  %v2867_v11 = vpack.c.bf16 %v308_v7, %v307_v6  ;;  %v309_v12 = vld [vmem:[%s3124_s20 + $0x30] sm:$0xff] }
  0x15   : > { %2860 = vmatprep.subr.bf16.mxu0 %v2859_v3  ;;  %v243_v10 = vld [vmem:[%s3134_s23] sm:$0xff]  ;;  %v2885_v13 = vpack.c.bf16 %v316_v9, %v315_v8  ;;  %v310_v14 = vld [vmem:[%s3124_s20 + $0x38] sm:$0xff]  ;;  %v317_v15 = vld [vmem:[%s3124_s20 + $0x70] sm:$0xff] }
  0x16   : > { %2862 = vmatpush3.bf16.msra.mxu0 %v2859_v3  ;;  %2533 = vmatprep.mubr.msk.f32.mxu0 %vm363_vm0, %v243_v10  ;;  %v318_v16 = vld [vmem:[%s3124_s20 + $0x78] sm:$0xff]  ;;  %v319_v18 = vld [vmem:[%s3124_s20 + $0x80] sm:$0xff]  ;;  %v320_v19 = vld [vmem:[%s3124_s20 + $0x88] sm:$0xff]  ;;  %v2871_v20 = vpack.c.bf16 %v310_v14, %v309_v12 }
  0x17   : > { %2864 = vmatprep.subr.bf16.mxu0 %v2863_v5  ;;  %2886 = vmatprep.subr.bf16.mxu1 %v2885_v13  ;;  %v2889_v17 = vpack.c.bf16 %v318_v16, %v317_v15  ;;  %v311_v21 = vld [vmem:[%s3124_s20 + $0x40] sm:$0xff]  ;;  %v2893_v22 = vpack.c.bf16 %v320_v19, %v319_v18  ;;  %v312_v23 = vld [vmem:[%s3124_s20 + $0x48] sm:$0xff]  ;;  %v321_v24 = vld [vmem:[%s3124_s20 + $0x90] sm:$0xff] }
  0x18   : > { %2888 = vmatpush3.bf16.msra.mxu1 %v2885_v13  ;;  %v322_v25 = vld [vmem:[%s3124_s20 + $0x98] sm:$0xff]  ;;  %v2875_v26 = vpack.c.bf16 %v312_v23, %v311_v21  ;;  %v313_v27 = vld [vmem:[%s3124_s20 + $0x50] sm:$0xff]  ;;  %v323_v30 = vld [vmem:[%s3124_s20 + $0xa0] sm:$0xff] }
  0x19   : > { %2890 = vmatprep.subr.bf16.mxu1 %v2889_v17  ;;  %v2897_v28 = vpack.c.bf16 %v322_v25, %v321_v24  ;;  %v314_v29 = vld [vmem:[%s3124_s20 + $0x58] sm:$0x3]  ;;  %v324_v31 = vld [vmem:[%s3124_s20 + $0xa8] sm:$0xff]  ;;  %v255_v32 = vld [vmem:[%s3134_s23 + $0x60] sm:$0xff] }
  0x1a   : > { %2866 = vmatpush3.bf16.msra.mxu0 %v2863_v5  ;;  %v2879_v33 = vpack.c.bf16 %v314_v29, %v313_v27  ;;  %v327_v35 = vld [vmem:[%s3124_s20 + $0xc0] sm:$0xff]  ;;  %v2901_v36 = vpack.c.bf16 %v324_v31, %v323_v30  ;;  %v328_v37 = vld [vmem:[%s3124_s20 + $0xc8] sm:$0xff]  ;;  %v325_v38 = vld [vmem:[%s3124_s20 + $0xb0] sm:$0xff]  ;;  %2575 = vmatprep.mubr.msk.f32.mxu1 %vm363_vm0, %v255_v32 }
  0x1b   : > { %2868 = vmatprep.subr.bf16.mxu0 %v2867_v11  ;;  %v326_v39 = vld [vmem:[%s3124_s20 + $0xb8] sm:$0x3]  ;;  %v2911_v40 = vpack.c.bf16 %v328_v37, %v327_v35  ;;  %v329_v42 = vld [vmem:[%s3124_s20 + $0xd0] sm:$0xff]  ;;  %v339_v44 = vld [vmem:[%s3124_s20 + $0x120] sm:$0xff] }
  0x1c   : > { %2892 = vmatpush3.bf16.msra.mxu1 %v2889_v17  ;;  %v2905_v41 = vpack.c.bf16 %v326_v39, %v325_v38  ;;  %v330_v43 = vld [vmem:[%s3124_s20 + $0xd8] sm:$0xff]  ;;  %v340_v45 = vld [vmem:[%s3124_s20 + $0x128] sm:$0xff]  ;;  %v245_v47 = vld [vmem:[%s3134_s23 + $0x10] sm:$0xff] }
  0x1d   : > { %2894 = vmatprep.subr.bf16.mxu1 %v2893_v22  ;;  %v244_v46 = vld [vmem:[%s3134_s23 + $0x8] sm:$0xff]  ;;  %v2915_v48 = vpack.c.bf16 %v330_v43, %v329_v42  ;;  %v331_v49 = vld [vmem:[%s3124_s20 + $0xe0] sm:$0xff]  ;;  %v2937_v51 = vpack.c.bf16 %v340_v45, %v339_v44  ;;  %v246_v52 = vld [vmem:[%s3134_s23 + $0x18] sm:$0xff] }
  0x1e   : > { %2870 = vmatpush3.bf16.msra.mxu0 %v2867_v11  ;;  %v332_v50 = vld [vmem:[%s3124_s20 + $0xe8] sm:$0xff]  ;;  %v341_v53 = vld [vmem:[%s3124_s20 + $0x130] sm:$0xff]  ;;  %v342_v54 = vld [vmem:[%s3124_s20 + $0x138] sm:$0xff] }
  0x1f   : > { %2872 = vmatprep.subr.bf16.mxu0 %v2871_v20  ;;  %v247_v55 = vld [vmem:[%s3134_s23 + $0x20] sm:$0xff]  ;;  %v2919_v56 = vpack.c.bf16 %v332_v50, %v331_v49  ;;  %v333_v57 = vld [vmem:[%s3124_s20 + $0xf0] sm:$0xff]  ;;  %v334_v58 = vld [vmem:[%s3124_s20 + $0xf8] sm:$0xff]  ;;  %v2941_v61 = vpack.c.bf16 %v342_v54, %v341_v53 }
  0x20   : > { %2896 = vmatpush3.bf16.msra.mxu1 %v2893_v22  ;;  %v256_v59 = vld [vmem:[%s3134_s23 + $0x68] sm:$0xff]  ;;  %v257_v60 = vld [vmem:[%s3134_s23 + $0x70] sm:$0xff]  ;;  %v343_v63 = vld [vmem:[%s3124_s20 + $0x140] sm:$0xff]  ;;  %v2923_v2 = vpack.c.bf16 %v334_v58, %v333_v57 }
  0x21   : > { %2898 = vmatprep.subr.bf16.mxu1 %v2897_v28  ;;  %v248_v62 = vld [vmem:[%s3134_s23 + $0x28] sm:$0xff]  ;;  %v249_v1 = vld [vmem:[%s3134_s23 + $0x30] sm:$0xff]  ;;  %v335_v3 = vld [vmem:[%s3124_s20 + $0x100] sm:$0xff] }
  0x22   : > { %2874 = vmatpush3.bf16.msra.mxu0 %v2871_v20  ;;  %v344_v0 = vld [vmem:[%s3124_s20 + $0x148] sm:$0xff]  ;;  %v258_v5 = vld [vmem:[%s3134_s23 + $0x78] sm:$0xff]  ;;  %v259_v6 = vld [vmem:[%s3134_s23 + $0x80] sm:$0xff] }
  0x23   : > { %2876 = vmatprep.subr.bf16.mxu0 %v2875_v26  ;;  %v336_v4 = vld [vmem:[%s3124_s20 + $0x108] sm:$0xff]  ;;  %v2945_v7 = vpack.c.bf16 %v344_v0, %v343_v63  ;;  %v250_v8 = vld [vmem:[%s3134_s23 + $0x38] sm:$0xff]  ;;  %v345_v9 = vld [vmem:[%s3124_s20 + $0x150] sm:$0xff] }
  0x24   : > { %2900 = vmatpush3.bf16.msra.mxu1 %v2897_v28  ;;  %v346_v10 = vld [vmem:[%s3124_s20 + $0x158] sm:$0xff]  ;;  %v251_v11 = vld [vmem:[%s3134_s23 + $0x40] sm:$0xff]  ;;  %v2927_v12 = vpack.c.bf16 %v336_v4, %v335_v3  ;;  %v337_v13 = vld [vmem:[%s3124_s20 + $0x110] sm:$0xff] }
  0x25   : > { %2902 = vmatprep.subr.bf16.mxu1 %v2901_v36  ;;  %v338_v14 = vld [vmem:[%s3124_s20 + $0x118] sm:$0x3]  ;;  %v260_v15 = vld [vmem:[%s3134_s23 + $0x88] sm:$0xff]  ;;  %v261_v16 = vld [vmem:[%s3134_s23 + $0x90] sm:$0xff]  ;;  %v2949_v17 = vpack.c.bf16 %v346_v10, %v345_v9 }
  0x26   : > { %2878 = vmatpush3.bf16.msra.mxu0 %v2875_v26  ;;  %v252_v18 = vld [vmem:[%s3134_s23 + $0x48] sm:$0xff]  ;;  %v347_v19 = vld [vmem:[%s3124_s20 + $0x160] sm:$0xff]  ;;  %v253_v21 = vld [vmem:[%s3134_s23 + $0x50] sm:$0xff]  ;;  %v2931_v22 = vpack.c.bf16 %v338_v14, %v337_v13 }
  0x27   : > { %2881 = vmatprep.subr.msk.bf16.mxu0 %vm3157_vm3, %v2879_v33  ;;  %v348_v20 = vld [vmem:[%s3124_s20 + $0x168] sm:$0xff]  ;;  %v351_v23 = vld [vmem:[%s3124_s20 + $0x180] sm:$0xff]  ;;  %v262_v25 = vld [vmem:[%s3134_s23 + $0x98] sm:$0xff] }
  0x28   : > { %2904 = vmatpush3.bf16.msra.mxu1 %v2901_v36  ;;  %v352_v24 = vld [vmem:[%s3124_s20 + $0x188] sm:$0xff]  ;;  %v263_v26 = vld [vmem:[%s3134_s23 + $0xa0] sm:$0xff]  ;;  %v2953_v27 = vpack.c.bf16 %v348_v20, %v347_v19  ;;  %v254_v28 = vld [vmem:[%s3134_s23 + $0x58] sm:$0x3] }
  0x29   : > { %2907 = vmatprep.subr.msk.bf16.mxu1 %vm3157_vm3, %v2905_v41  ;;  %v349_v29 = vld [vmem:[%s3124_s20 + $0x170] sm:$0xff]  ;;  %v350_v30 = vld [vmem:[%s3124_s20 + $0x178] sm:$0x3]  ;;  %v267_v31 = vld [vmem:[%s3134_s23 + $0xc0] sm:$0xff]  ;;  %v2963_v32 = vpack.c.bf16 %v352_v24, %v351_v23 }
  0x2a   : > { %2884 = vmatpush3.bf16.msk.msra.mxu0 %vm3157_vm3, %v2879_v33  ;;  %v353_v33 = vld [vmem:[%s3124_s20 + $0x190] sm:$0xff]  ;;  %v354_v35 = vld [vmem:[%s3124_s20 + $0x198] sm:$0xff]  ;;  %v264_v36 = vld [vmem:[%s3134_s23 + $0xa8] sm:$0xff]  ;;  %v2957_v38 = vpack.c.bf16 %v350_v30, %v349_v29 }
  0x2b   : > { %2912 = vmatprep.subr.bf16.mxu0 %v2911_v40  ;;  %v265_v37 = vld [vmem:[%s3134_s23 + $0xb0] sm:$0xff]  ;;  %v268_v39 = vld [vmem:[%s3134_s23 + $0xc8] sm:$0xff]  ;;  %v2967_v43 = vpack.c.bf16 %v354_v35, %v353_v33  ;;  %v355_v44 = vld [vmem:[%s3124_s20 + $0x1a0] sm:$0xff] }
  0x2c   : > { %2910 = vmatpush3.bf16.msk.msra.mxu1 %vm3157_vm3, %v2905_v41  ;;  %v1186_v41 = vld [vmem:[%s3594_s2 + $0x8] sm:$0xff]  ;;  %v269_v42 = vld [vmem:[%s3134_s23 + $0xd0] sm:$0xff]  ;;  %v270_v49 = vld [vmem:[%s3134_s23 + $0xd8] sm:$0xff] }
  0x2d   : > { %2534 = vmatmul.mubr.msk.f32.vlgmr.msra.gmra.mrb[0].mxu0 %vm363_vm0, %v244_v46  ;;  %2938 = vmatprep.subr.bf16.mxu1 %v2937_v51  ;;  %v356_v45 = vld [vmem:[%s3124_s20 + $0x1a8] sm:$0xff]  ;;  %v266_v46 = vld [vmem:[%s3134_s23 + $0xb8] sm:$0x3]  ;;  %v1187_v50 = vld [vmem:[%s3594_s2 + $0x10] sm:$0xff] }
  0x2e   : > { %2914 = vmatpush3.bf16.msra.mxu0 %v2911_v40  ;;  %2536 = vmatprep.mubr.msk.f32.mxu0 %vm363_vm0, %v245_v47  ;;  %v1185_v40 = vld [vmem:[%s3594_s2] sm:$0xff]  ;;  %v2971_v53 = vpack.c.bf16 %v356_v45, %v355_v44  ;;  %v357_v54 = vld [vmem:[%s3124_s20 + $0x1b0] sm:$0xff]  ;;  %v360_v63 = vld [vmem:[%s3124_s20 + $0x1c8] sm:$0xff] }
  0x2f   : > { %2916 = vmatprep.subr.bf16.mxu0 %v2915_v48  ;;  %2576 = vmatmul.mubr.msk.f32.vlgmr.msra.gmra.mrb[0].mxu1 %vm363_vm0, %v256_v59  ;;  %v279_v47 = vld [vmem:[%s3134_s23 + $0x120] sm:$0xff]  ;;  %v281_v57 = vld [vmem:[%s3134_s23 + $0x130] sm:$0xff]  ;;  %v272_v59 = vld [vmem:[%s3134_s23 + $0xe8] sm:$0xff] }
  0x30   : > { %2940 = vmatpush3.bf16.msra.mxu1 %v2937_v51  ;;  %2578 = vmatprep.mubr.msk.f32.mxu1 %vm363_vm0, %v257_v60  ;;  %v1188_v51 = vld [vmem:[%s3594_s2 + $0x18] sm:$0xff]  ;;  %v273_v60 = vld [vmem:[%s3134_s23 + $0xf0] sm:$0xff]  ;;  %v3303_v3 = vld [vmem:[%s3594_s2 + $0x20] sm:$0x7f] }
  0x31   : > { %2537 = vmatmul.mubr.msk.f32.gmra.mrb[2].mxu0 %vm363_vm0, %v246_v52  ;;  %2942 = vmatprep.subr.bf16.mxu1 %v2941_v61  ;;  %v271_v52 = vld [vmem:[%s3134_s23 + $0xe0] sm:$0xff]  ;;  %v3284_v58 = vpack.c.bf16 %v1188_v51, %v1187_v50  ;;  %v282_v0 = vld [vmem:[%s3134_s23 + $0x138] sm:$0xff]  ;;  %v285_v9 = vld [vmem:[%s3134_s23 + $0x150] sm:$0xff] }
  0x32   : > { %2918 = vmatpush3.bf16.msra.mxu0 %v2915_v48  ;;  %2539 = vmatprep.mubr.msk.f32.mxu0 %vm363_vm0, %v247_v55  ;;  %v3263_v48 = vpack.c.bf16 %v1186_v41, %v1185_v40  ;;  %v358_v55 = vld [vmem:[%s3124_s20 + $0x1b8] sm:$0xff]  ;;  %v275_v4 = vld [vmem:[%s3134_s23 + $0x100] sm:$0xff]  ;;  %v276_v10 = vld [vmem:[%s3134_s23 + $0x108] sm:$0xff] }
  0x33   : > { %2920 = vmatprep.subr.bf16.mxu0 %v2919_v56  ;;  %2579 = vmatmul.mubr.msk.f32.gmra.mrb[2].mxu1 %vm363_vm0, %v258_v5  ;;  %v286_v13 = vld [vmem:[%s3134_s23 + $0x158] sm:$0xff]  ;;  %v287_v14 = vld [vmem:[%s3134_s23 + $0x160] sm:$0xff]  ;;  %v292_v19 = vld [vmem:[%s3134_s23 + $0x188] sm:$0xff] }
  0x34   : > { %2944 = vmatpush3.bf16.msra.mxu1 %v2941_v61  ;;  %2581 = vmatprep.mubr.msk.f32.mxu1 %vm363_vm0, %v259_v6  ;;  %v2975_v61 = vpack.c.bf16 %v358_v55, %v357_v54  ;;  %v361_v6 = vld [vmem:[%s3124_s20 + $0x1d0] sm:$0xff]  ;;  %v294_v34 = vld [vmem:[%s3134_s23 + $0x198] sm:$0xff]  ;;  %v296_v23 = vld [vmem:[%s3134_s23 + $0x1a8] sm:$0xff] }
  0x35   : > { %2540 = vmatmul.mubr.msk.f32.gmra.mrb[4].mxu0 %vm363_vm0, %v248_v62  ;;  %2946 = vmatprep.subr.bf16.mxu1 %v2945_v7  ;;  %v359_v62 = vld [vmem:[%s3124_s20 + $0x1c0] sm:$0xff]  ;;  %v293_v20 = vld [vmem:[%s3134_s23 + $0x190] sm:$0xff]  ;;  %v302_v29 = vld [vmem:[%s3134_s23 + $0x1d8] sm:$0x3] }
  0x36   : > { %2922 = vmatpush3.bf16.msra.mxu0 %v2919_v56  ;;  %2542 = vmatprep.mubr.msk.f32.mxu0 %vm363_vm0, %v249_v1  ;;  %v280_v56 = vld [vmem:[%s3134_s23 + $0x128] sm:$0xff]  ;;  %v283_v1 = vld [vmem:[%s3134_s23 + $0x140] sm:$0xff]  ;;  %v2979_v5 = vpack.c.bf16 %v360_v63, %v359_v62  ;;  %v297_v24 = vld [vmem:[%s3134_s23 + $0x1b0] sm:$0xff] }
  0x37   : > { %2924 = vmatprep.subr.bf16.mxu0 %v2923_v2  ;;  %2582 = vmatmul.mubr.msk.f32.gmra.mrb[4].mxu1 %vm363_vm0, %v260_v15  ;;  %v278_v15 = vld [vmem:[%s3134_s23 + $0x118] sm:$0x3] }
  0x38   : > { %2948 = vmatpush3.bf16.msra.mxu1 %v2945_v7  ;;  %2584 = vmatprep.mubr.msk.f32.mxu1 %vm363_vm0, %v261_v16  ;;  %v362_v7 = vld [vmem:[%s3124_s20 + $0x1d8] sm:$0x3]  ;;  %v291_v16 = vld [vmem:[%s3134_s23 + $0x180] sm:$0xff] }
  0x39   : > { %2543 = vmatmul.mubr.msk.f32.gmra.mrb[6].mxu0 %vm363_vm0, %v250_v8  ;;  %2950 = vmatprep.subr.bf16.mxu1 %v2949_v17  ;;  %v284_v8 = vld [vmem:[%s3134_s23 + $0x148] sm:$0xff] }
  0x3a   : > { %2926 = vmatpush3.bf16.msra.mxu0 %v2923_v2  ;;  %2545 = vmatprep.mubr.msk.f32.mxu0 %vm363_vm0, %v251_v11  ;;  %v274_v2 = vld [vmem:[%s3134_s23 + $0xf8] sm:$0xff]  ;;  %v277_v11 = vld [vmem:[%s3134_s23 + $0x110] sm:$0xff] }
  0x3b   : > { %2928 = vmatprep.subr.bf16.mxu0 %v2927_v12  ;;  %2585 = vmatmul.mubr.msk.f32.gmra.mrb[6].mxu1 %vm363_vm0, %v262_v25  ;;  %v298_v25 = vld [vmem:[%s3134_s23 + $0x1b8] sm:$0xff] }
  0x3c   : > { %2952 = vmatpush3.bf16.msra.mxu1 %v2949_v17  ;;  %2587 = vmatprep.mubr.msk.f32.mxu1 %vm363_vm0, %v263_v26  ;;  %v288_v17 = vld [vmem:[%s3134_s23 + $0x168] sm:$0xff]  ;;  %v299_v26 = vld [vmem:[%s3134_s23 + $0x1c0] sm:$0xff] }
  0x3d   : > { %2546 = vmatmul.mubr.msk.f32.gmra.mrb[8].mxu0 %vm363_vm0, %v252_v18  ;;  %2954 = vmatprep.subr.bf16.mxu1 %v2953_v27  ;;  %v289_v18 = vld [vmem:[%s3134_s23 + $0x170] sm:$0xff] }
  0x3e   : > { %2930 = vmatpush3.bf16.msra.mxu0 %v2927_v12  ;;  %2548 = vmatprep.mubr.msk.f32.mxu0 %vm363_vm0, %v253_v21  ;;  %v2983_v12 = vpack.c.bf16 %v362_v7, %v361_v6  ;;  %v290_v21 = vld [vmem:[%s3134_s23 + $0x178] sm:$0x3] }
  0x3f   : > { %2933 = vmatprep.subr.msk.bf16.mxu0 %vm3157_vm3, %v2931_v22  ;;  %2588 = vmatmul.mubr.msk.f32.gmra.mrb[8].mxu1 %vm363_vm0, %v264_v36 }
  0x40   : > { %2956 = vmatpush3.bf16.msra.mxu1 %v2953_v27  ;;  %2590 = vmatprep.mubr.msk.f32.mxu1 %vm363_vm0, %v265_v37  ;;  %v300_v27 = vld [vmem:[%s3134_s23 + $0x1c8] sm:$0xff] }
  0x41   : > { %2549 = vmatmul.mubr.msk.f32.gmra.mrb[10].mxu0 %vm363_vm0, %v254_v28  ;;  %2959 = vmatprep.subr.msk.bf16.mxu1 %vm3157_vm3, %v2957_v38  ;;  %v301_v28 = vld [vmem:[%s3134_s23 + $0x1d0] sm:$0xff] }
  0x42   : > { %2936 = vmatpush3.bf16.msk.msra.mxu0 %vm3157_vm3, %v2931_v22  ;;  %2617 = vmatprep.mubr.msk.f32.mxu0 %vm363_vm0, %v267_v31  ;;  %v295_v22 = vld [vmem:[%s3134_s23 + $0x1a0] sm:$0xff] }
  0x43   : > { %2964 = vmatprep.subr.bf16.mxu0 %v2963_v32  ;;  %2591 = vmatmul.mubr.msk.f32.gmra.mrb[10].mxu1 %vm363_vm0, %v266_v46 }
  0x44   : > { %2962 = vmatpush3.bf16.msk.msra.mxu1 %vm3157_vm3, %v2957_v38  ;;  %2659 = vmatprep.mubr.msk.f32.mxu1 %vm363_vm0, %v279_v47 }
  0x45   : > { %2618 = vmatmul.mubr.msk.f32.vlgmr.msra.gmra.mrb[12].mxu0 %vm363_vm0, %v268_v39  ;;  %2990 = vmatprep.subr.bf16.mxu1 %v3263_v48 }
  0x46   : > { %2966 = vmatpush3.bf16.msra.mxu0 %v2963_v32  ;;  %2620 = vmatprep.mubr.msk.f32.mxu0 %vm363_vm0, %v269_v42 }
  0x47   : > { %2968 = vmatprep.subr.bf16.mxu0 %v2967_v43  ;;  %2660 = vmatmul.mubr.msk.f32.vlgmr.msra.gmra.mrb[12].mxu1 %vm363_vm0, %v280_v56 }
  0x48   : > { %2662 = vmatprep.mubr.msk.f32.mxu1 %vm363_vm0, %v281_v57  ;;  %2992 = vmatpush3.bf16.msra.mxu1 %v3263_v48 }
  0x49   : > { %2621 = vmatmul.mubr.msk.f32.gmra.mrb[14].mxu0 %vm363_vm0, %v270_v49  ;;  %2994 = vmatprep.subr.bf16.mxu1 %v3284_v58 }
  0x4a   : > { %2970 = vmatpush3.bf16.msra.mxu0 %v2967_v43  ;;  %2623 = vmatprep.mubr.msk.f32.mxu0 %vm363_vm0, %v271_v52 }
  0x4b   : > { %2972 = vmatprep.subr.bf16.mxu0 %v2971_v53  ;;  %2663 = vmatmul.mubr.msk.f32.gmra.mrb[14].mxu1 %vm363_vm0, %v282_v0 }
  0x4c   : > { %2665 = vmatprep.mubr.msk.f32.mxu1 %vm363_vm0, %v283_v1  ;;  %2996 = vmatpush3.bf16.msra.mxu1 %v3284_v58 }
  0x4d   : > { %2624 = vmatmul.mubr.msk.f32.gmra.mrb[16].mxu0 %vm363_vm0, %v272_v59  ;;  %2727 = vmatprep.subr.msk.mxu1 %vm1227_vm4, %v3303_v3 }
  0x4e   : > { %2974 = vmatpush3.bf16.msra.mxu0 %v2971_v53  ;;  %2626 = vmatprep.mubr.msk.f32.mxu0 %vm363_vm0, %v273_v60 }
  0x4f   : > { %2976 = vmatprep.subr.bf16.mxu0 %v2975_v61  ;;  %2666 = vmatmul.mubr.msk.f32.gmra.mrb[16].mxu1 %vm363_vm0, %v284_v8 }
  0x50   : > { %2668 = vmatprep.mubr.msk.f32.mxu1 %vm363_vm0, %v285_v9  ;;  %2728 = vmatpush3.msk.msra.mxu1 %vm1227_vm4, %v3303_v3 }
  0x51   : > { %2627 = vmatmul.mubr.msk.f32.gmra.mrb[18].mxu0 %vm363_vm0, %v274_v2  ;;  %3006 = vmatprep.subr.bf16.mxu1 %v3263_v48 }
  0x52   : > { %2978 = vmatpush3.bf16.msra.mxu0 %v2975_v61  ;;  %2629 = vmatprep.mubr.msk.f32.mxu0 %vm363_vm0, %v275_v4 }
  0x53   : > { %2980 = vmatprep.subr.bf16.mxu0 %v2979_v5  ;;  %2669 = vmatmul.mubr.msk.f32.gmra.mrb[18].mxu1 %vm363_vm0, %v286_v13 }
  0x54   : > { %2671 = vmatprep.mubr.msk.f32.mxu1 %vm363_vm0, %v287_v14 }
  0x55   : > { %2630 = vmatmul.mubr.msk.f32.gmra.mrb[20].mxu0 %vm363_vm0, %v276_v10 }
  0x56   : > { %2982 = vmatpush3.bf16.msra.mxu0 %v2979_v5  ;;  %2632 = vmatprep.mubr.msk.f32.mxu0 %vm363_vm0, %v277_v11 }
  0x57   : > { %2985 = vmatprep.subr.msk.bf16.mxu0 %vm3157_vm3, %v2983_v12  ;;  %2672 = vmatmul.mubr.msk.f32.gmra.mrb[20].mxu1 %vm363_vm0, %v288_v17 }
  0x58   : > { %2674 = vmatprep.mubr.msk.f32.mxu1 %vm363_vm0, %v289_v18 }
  0x59   : > { %2633 = vmatmul.mubr.msk.f32.gmra.mrb[22].mxu0 %vm363_vm0, %v278_v15 }
  0x5a   : > { %2988 = vmatpush3.bf16.msk.msra.mxu0 %vm3157_vm3, %v2983_v12  ;;  %2701 = vmatprep.mubr.msk.f32.mxu0 %vm363_vm0, %v291_v16 }
  0x5b   : > { %2998 = vmatprep.subr.bf16.mxu0 %v3263_v48  ;;  %2675 = vmatmul.mubr.msk.f32.gmra.mrb[22].mxu1 %vm363_vm0, %v290_v21 }
  0x5d   : > { %2702 = vmatmul.mubr.msk.f32.vlgmr.msra.gmra.mrb[24].mxu0 %vm363_vm0, %v292_v19 }
  0x5e   : > { %2704 = vmatprep.mubr.msk.f32.mxu0 %vm363_vm0, %v293_v20  ;;  %3000 = vmatpush3.bf16.msra.mxu0 %v3263_v48 }
  0x5f   : > { %3002 = vmatprep.subr.bf16.mxu0 %v3284_v58 }
  0x61   : > { %2705 = vmatmul.mubr.msk.f32.gmra.mrb[26].mxu0 %vm363_vm0, %v294_v34 }
  0x62   : > { %2707 = vmatprep.mubr.msk.f32.mxu0 %vm363_vm0, %v295_v22  ;;  %3004 = vmatpush3.bf16.msra.mxu0 %v3284_v58 }
  0x63   : > { %2755 = vmatprep.subr.msk.mxu0 %vm1227_vm4, %v3303_v3 }
  0x65   : > { %2708 = vmatmul.mubr.msk.f32.gmra.mrb[28].mxu0 %vm363_vm0, %v296_v23 }
  0x66   : > { %2710 = vmatprep.mubr.msk.f32.mxu0 %vm363_vm0, %v297_v24  ;;  %2756 = vmatpush3.msk.msra.mxu0 %vm1227_vm4, %v3303_v3 }
  0x67   : > { %3014 = vmatprep.subr.bf16.mxu0 %v3263_v48 }
  0x69   : > { %2711 = vmatmul.mubr.msk.f32.gmra.mrb[30].mxu0 %vm363_vm0, %v298_v25 }
  0x6a   : > { %2713 = vmatprep.mubr.msk.f32.mxu0 %vm363_vm0, %v299_v26 }
  0x6d   : > { %2714 = vmatmul.mubr.msk.f32.gmra.mrb[32].mxu0 %vm363_vm0, %v300_v27 }
  0x6e   : > { %2716 = vmatprep.mubr.msk.f32.mxu0 %vm363_vm0, %v301_v28 }
  0x71   : > { %2717 = vmatmul.mubr.msk.f32.gmra.mrb[34].mxu0 %vm363_vm0, %v302_v29 }
 0x100   : > { %v2535_v30 = vpop.f32.mrb[0].mxu0 }
 0x101   : > { %v470_v31 = vpop.f32.mrb[1].mxu0 }
 0x102   : > { %2729 = vmatprep.mubr.msk.f32.mxu1 %vm1190_vm5, %v470_v31  ;;  %v2577_v35 = vpop.f32.mrb[0].mxu1 }
 0x103   : > { %2730 = vmatmul.mubr.msk.f32.vlgmr.msra.gmra.mrb[24].mxu1 %vm1190_vm5, %v2535_v30  ;;  %v634_v36 = vpop.f32.mrb[1].mxu1 }
 0x104   : > { %v2538_v32 = vpop.f32.mrb[2].mxu0  ;;  %3008 = vmatpush3.bf16.msra.mxu1 %v3263_v48  ;;  %2757 = vmatprep.mubr.msk.f32.mxu0 %vm1190_vm5, %v634_v36 }
 0x105   : > { %v480_v33 = vpop.f32.mrb[3].mxu0  ;;  %3010 = vmatprep.subr.bf16.mxu1 %v3284_v58  ;;  %2758 = vmatmul.mubr.msk.f32.vlgmr.msra.gmra.mrb[36].mxu0 %vm1190_vm5, %v2577_v35 }
 0x106   : > { %2732 = vmatprep.mubr.msk.f32.mxu1 %vm1190_vm5, %v480_v33  ;;  %v2580_v39 = vpop.f32.mrb[2].mxu1  ;;  %3016 = vmatpush3.bf16.msra.mxu0 %v3263_v48 }
 0x107   : > { %2733 = vmatmul.mubr.msk.f32.gmra.mrb[26].mxu1 %vm1190_vm5, %v2538_v32  ;;  %v644_v40 = vpop.f32.mrb[3].mxu1  ;;  %3018 = vmatprep.subr.bf16.mxu0 %v3284_v58 }
 0x108   : > { %v2541_v37 = vpop.f32.mrb[4].mxu0  ;;  %3012 = vmatpush3.bf16.msra.mxu1 %v3284_v58  ;;  %2760 = vmatprep.mubr.msk.f32.mxu0 %vm1190_vm5, %v644_v40 }
 0x109   : > { %v490_v38 = vpop.f32.mrb[5].mxu0  ;;  %2783 = vmatprep.subr.msk.mxu1 %vm1227_vm4, %v3303_v3  ;;  %2761 = vmatmul.mubr.msk.f32.gmra.mrb[38].mxu0 %vm1190_vm5, %v2580_v39 }
 0x10a   : > { %2735 = vmatprep.mubr.msk.f32.mxu1 %vm1190_vm5, %v490_v38  ;;  %v2583_v43 = vpop.f32.mrb[4].mxu1  ;;  %3020 = vmatpush3.bf16.msra.mxu0 %v3284_v58 }
 0x10b   : > { %2736 = vmatmul.mubr.msk.f32.gmra.mrb[28].mxu1 %vm1190_vm5, %v2541_v37  ;;  %v654_v44 = vpop.f32.mrb[5].mxu1  ;;  %2811 = vmatprep.subr.msk.mxu0 %vm1227_vm4, %v3303_v3 }
 0x10c   : > { %v2544_v41 = vpop.f32.mrb[6].mxu0  ;;  %2784 = vmatpush3.msk.msra.mxu1 %vm1227_vm4, %v3303_v3  ;;  %2763 = vmatprep.mubr.msk.f32.mxu0 %vm1190_vm5, %v654_v44 }
 0x10d   : > { %v500_v42 = vpop.f32.mrb[7].mxu0  ;;  %3022 = vmatprep.subr.bf16.mxu1 %v3263_v48  ;;  %2764 = vmatmul.mubr.msk.f32.gmra.mrb[40].mxu0 %vm1190_vm5, %v2583_v43 }
 0x10e   : > { %2738 = vmatprep.mubr.msk.f32.mxu1 %vm1190_vm5, %v500_v42  ;;  %v2586_v47 = vpop.f32.mrb[6].mxu1  ;;  %2812 = vmatpush3.msk.msra.mxu0 %vm1227_vm4, %v3303_v3 }
 0x10f   : > { %2739 = vmatmul.mubr.msk.f32.gmra.mrb[30].mxu1 %vm1190_vm5, %v2544_v41  ;;  %v664_v49 = vpop.f32.mrb[7].mxu1 }
 0x110   : > { %v2547_v45 = vpop.f32.mrb[8].mxu0  ;;  %2766 = vmatprep.mubr.msk.f32.mxu0 %vm1190_vm5, %v664_v49 }
 0x111   : > { %v510_v46 = vpop.f32.mrb[9].mxu0  ;;  %2767 = vmatmul.mubr.msk.f32.gmra.mrb[42].mxu0 %vm1190_vm5, %v2586_v47 }
 0x112   : > { %2741 = vmatprep.mubr.msk.f32.mxu1 %vm1190_vm5, %v510_v46  ;;  %v2589_v52 = vpop.f32.mrb[8].mxu1 }
 0x113   : > { %2742 = vmatmul.mubr.msk.f32.gmra.mrb[32].mxu1 %vm1190_vm5, %v2547_v45  ;;  %v674_v53 = vpop.f32.mrb[9].mxu1 }
 0x114   : > { %v2550_v50 = vpop.f32.mrb[10].mxu0  ;;  %2769 = vmatprep.mubr.msk.f32.mxu0 %vm1190_vm5, %v674_v53 }
 0x115   : > { %v520_v51 = vpop.f32.mrb[11].mxu0  ;;  %2770 = vmatmul.mubr.msk.f32.gmra.mrb[44].mxu0 %vm1190_vm5, %v2589_v52 }
 0x116   : > { %2744 = vmatprep.mubr.msk.f32.mxu1 %vm1190_vm5, %v520_v51  ;;  %v2592_v56 = vpop.f32.mrb[10].mxu1 }
 0x117   : > { %2745 = vmatmul.mubr.msk.f32.gmra.mrb[34].mxu1 %vm1190_vm5, %v2550_v50  ;;  %v684_v57 = vpop.f32.mrb[11].mxu1 }
 0x118   : > { %v2619_v54 = vpop.f32.mrb[12].mxu0  ;;  %2772 = vmatprep.mubr.msk.f32.mxu0 %vm1190_vm5, %v684_v57 }
 0x119   : > { %v798_v55 = vpop.f32.mrb[13].mxu0  ;;  %2773 = vmatmul.mubr.msk.f32.gmra.mrb[46].mxu0 %vm1190_vm5, %v2592_v56 }
 0x11a   : > { %2785 = vmatprep.mubr.msk.f32.mxu1 %vm1190_vm5, %v798_v55  ;;  %v2661_v61 = vpop.f32.mrb[12].mxu1 }
 0x11b   : > { %2786 = vmatmul.mubr.msk.f32.vlgmr.msra.gmra.mrb[36].mxu1 %vm1190_vm5, %v2619_v54  ;;  %v962_v62 = vpop.f32.mrb[13].mxu1 }
 0x11c   : > { %v2622_v59 = vpop.f32.mrb[14].mxu0  ;;  %3024 = vmatpush3.bf16.msra.mxu1 %v3263_v48  ;;  %2813 = vmatprep.mubr.msk.f32.mxu0 %vm1190_vm5, %v962_v62 }
 0x11d   : > { %v808_v60 = vpop.f32.mrb[15].mxu0  ;;  %3026 = vmatprep.subr.bf16.mxu1 %v3284_v58  ;;  %2814 = vmatmul.mubr.msk.f32.vlgmr.msra.gmra.mrb[48].mxu0 %vm1190_vm5, %v2661_v61 }
 0x11e   : > { %2788 = vmatprep.mubr.msk.f32.mxu1 %vm1190_vm5, %v808_v60  ;;  %v2664_v48 = vpop.f32.mrb[14].mxu1 }
 0x11f   : > { %2789 = vmatmul.mubr.msk.f32.gmra.mrb[38].mxu1 %vm1190_vm5, %v2622_v59  ;;  %v972_v1 = vpop.f32.mrb[15].mxu1 }
 0x120   : > { %v2625_v63 = vpop.f32.mrb[16].mxu0  ;;  %3028 = vmatpush3.bf16.msra.mxu1 %v3284_v58  ;;  %2816 = vmatprep.mubr.msk.f32.mxu0 %vm1190_vm5, %v972_v1 }
 0x121   : > { %v818_v0 = vpop.f32.mrb[17].mxu0  ;;  %2839 = vmatprep.subr.msk.mxu1 %vm1227_vm4, %v3303_v3  ;;  %2817 = vmatmul.mubr.msk.f32.gmra.mrb[50].mxu0 %vm1190_vm5, %v2664_v48 }
 0x122   : > { %2791 = vmatprep.mubr.msk.f32.mxu1 %vm1190_vm5, %v818_v0  ;;  %v2667_v4 = vpop.f32.mrb[16].mxu1 }
 0x123   : > { %2792 = vmatmul.mubr.msk.f32.gmra.mrb[40].mxu1 %vm1190_vm5, %v2625_v63  ;;  %v982_v5 = vpop.f32.mrb[17].mxu1 }
 0x124   : > { %v2628_v2 = vpop.f32.mrb[18].mxu0  ;;  %2840 = vmatpush3.msk.msra.mxu1 %vm1227_vm4, %v3303_v3  ;;  %2819 = vmatprep.mubr.msk.f32.mxu0 %vm1190_vm5, %v982_v5 }
 0x125   : > { %v828_v58 = vpop.f32.mrb[19].mxu0  ;;  %2820 = vmatmul.mubr.msk.f32.gmra.mrb[52].mxu0 %vm1190_vm5, %v2667_v4 }
 0x126   : > { %2794 = vmatprep.mubr.msk.f32.mxu1 %vm1190_vm5, %v828_v58  ;;  %v2670_v3 = vpop.f32.mrb[18].mxu1 }
 0x127   : > { %2795 = vmatmul.mubr.msk.f32.gmra.mrb[42].mxu1 %vm1190_vm5, %v2628_v2  ;;  %v992_v8 = vpop.f32.mrb[19].mxu1 }
 0x128   : > { %v2631_v6 = vpop.f32.mrb[20].mxu0  ;;  %2822 = vmatprep.mubr.msk.f32.mxu0 %vm1190_vm5, %v992_v8 }
 0x129   : > { %v838_v7 = vpop.f32.mrb[21].mxu0  ;;  %2823 = vmatmul.mubr.msk.f32.gmra.mrb[54].mxu0 %vm1190_vm5, %v2670_v3 }
 0x12a   : > { %2797 = vmatprep.mubr.msk.f32.mxu1 %vm1190_vm5, %v838_v7  ;;  %v2673_v11 = vpop.f32.mrb[20].mxu1 }
 0x12b   : > { %2798 = vmatmul.mubr.msk.f32.gmra.mrb[44].mxu1 %vm1190_vm5, %v2631_v6  ;;  %v1002_v12 = vpop.f32.mrb[21].mxu1 }
 0x12c   : > { %v2634_v9 = vpop.f32.mrb[22].mxu0  ;;  %2825 = vmatprep.mubr.msk.f32.mxu0 %vm1190_vm5, %v1002_v12 }
 0x12d   : > { %v848_v10 = vpop.f32.mrb[23].mxu0  ;;  %2826 = vmatmul.mubr.msk.f32.gmra.mrb[56].mxu0 %vm1190_vm5, %v2673_v11 }
 0x12e   : > { %2800 = vmatprep.mubr.msk.f32.mxu1 %vm1190_vm5, %v848_v10  ;;  %v2676_v15 = vpop.f32.mrb[22].mxu1 }
 0x12f   : > { %2801 = vmatmul.mubr.msk.f32.gmra.mrb[46].mxu1 %vm1190_vm5, %v2634_v9  ;;  %v1012_v16 = vpop.f32.mrb[23].mxu1 }
 0x130   : > { %v2703_v13 = vpop.f32.mrb[24].mxu0  ;;  %2828 = vmatprep.mubr.msk.f32.mxu0 %vm1190_vm5, %v1012_v16 }
 0x131   : > { %v1126_v14 = vpop.f32.mrb[25].mxu0  ;;  %2829 = vmatmul.mubr.msk.f32.gmra.mrb[58].mxu0 %vm1190_vm5, %v2676_v15 }
 0x132   : > { %2841 = vmatprep.mubr.msk.f32.mxu1 %vm1190_vm5, %v1126_v14 }
 0x133   : > { %2842 = vmatmul.mubr.msk.f32.vlgmr.msra.gmra.mrb[48].mxu1 %vm1190_vm5, %v2703_v13 }
 0x134   : > { %v2706_v17 = vpop.f32.mrb[26].mxu0 }
 0x135   : > { %v1136_v18 = vpop.f32.mrb[27].mxu0 }
 0x136   : > { %2844 = vmatprep.mubr.msk.f32.mxu1 %vm1190_vm5, %v1136_v18 }
 0x137   : > { %2845 = vmatmul.mubr.msk.f32.gmra.mrb[50].mxu1 %vm1190_vm5, %v2706_v17 }
 0x138   : > { %v2709_v19 = vpop.f32.mrb[28].mxu0 }
 0x139   : > { %v1146_v20 = vpop.f32.mrb[29].mxu0 }
 0x13a   : > { %2847 = vmatprep.mubr.msk.f32.mxu1 %vm1190_vm5, %v1146_v20 }
 0x13b   : > { %2848 = vmatmul.mubr.msk.f32.gmra.mrb[52].mxu1 %vm1190_vm5, %v2709_v19 }
 0x13c   : > { %v2712_v21 = vpop.f32.mrb[30].mxu0 }
 0x13d   : > { %v1156_v34 = vpop.f32.mrb[31].mxu0 }
 0x13e   : > { %2850 = vmatprep.mubr.msk.f32.mxu1 %vm1190_vm5, %v1156_v34 }
 0x13f   : > { %2851 = vmatmul.mubr.msk.f32.gmra.mrb[54].mxu1 %vm1190_vm5, %v2712_v21 }
 0x140   : > { %v2715_v22 = vpop.f32.mrb[32].mxu0 }
 0x141   : > { %v1166_v23 = vpop.f32.mrb[33].mxu0 }
 0x142   : > { %2853 = vmatprep.mubr.msk.f32.mxu1 %vm1190_vm5, %v1166_v23 }
 0x143   : > { %2854 = vmatmul.mubr.msk.f32.gmra.mrb[56].mxu1 %vm1190_vm5, %v2715_v22 }
 0x144   : > { %v2718_v24 = vpop.f32.mrb[34].mxu0 }
 0x145   : > { %v1176_v25 = vpop.f32.mrb[35].mxu0 }
 0x146   : > { %2856 = vmatprep.mubr.msk.f32.mxu1 %vm1190_vm5, %v1176_v25 }
 0x147   : > { %2857 = vmatmul.mubr.msk.f32.gmra.mrb[58].mxu1 %vm1190_vm5, %v2718_v24 }
 0x1d6   : > { %v2731_v26 = vpop.f32.mrb[24].mxu1 }
 0x1d7   : > { %2002 = vst.msk [vmem:[%s3461_s9 + $0x8] sm:$0xff] %vm2000_vm6, %v2731_v26  ;;  %v1297_v27 = vpop.f32.mrb[25].mxu1 }
 0x1d8   : > { %2001 = vst.msk [vmem:[%s3461_s9] sm:$0xff] %vm2000_vm6, %v1297_v27  ;;  %v2759_v30 = vpop.f32.mrb[36].mxu0 }
 0x1d9   : > { %2015 = vst.msk [vmem:[%s3461_s9 + $0x68] sm:$0xff] %vm2000_vm6, %v2759_v30  ;;  %v1458_v31 = vpop.f32.mrb[37].mxu0 }
 0x1da   : > { %v2734_v28 = vpop.f32.mrb[26].mxu1  ;;  %2014 = vst.msk [vmem:[%s3461_s9 + $0x60] sm:$0xff] %vm2000_vm6, %v1458_v31 }
 0x1db   : > { %2004 = vst.msk [vmem:[%s3461_s9 + $0x18] sm:$0xff] %vm2000_vm6, %v2734_v28  ;;  %v1307_v29 = vpop.f32.mrb[27].mxu1 }
 0x1dc   : > { %2003 = vst.msk [vmem:[%s3461_s9 + $0x10] sm:$0xff] %vm2000_vm6, %v1307_v29  ;;  %v2762_v35 = vpop.f32.mrb[38].mxu0 }
 0x1dd   : > { %2017 = vst.msk [vmem:[%s3461_s9 + $0x78] sm:$0xff] %vm2000_vm6, %v2762_v35  ;;  %v1468_v36 = vpop.f32.mrb[39].mxu0 }
 0x1de   : > { %v2737_v32 = vpop.f32.mrb[28].mxu1  ;;  %2016 = vst.msk [vmem:[%s3461_s9 + $0x70] sm:$0xff] %vm2000_vm6, %v1468_v36 }
 0x1df   : > { %2006 = vst.msk [vmem:[%s3461_s9 + $0x28] sm:$0xff] %vm2000_vm6, %v2737_v32  ;;  %v1317_v33 = vpop.f32.mrb[29].mxu1 }
 0x1e0   : > { %2005 = vst.msk [vmem:[%s3461_s9 + $0x20] sm:$0xff] %vm2000_vm6, %v1317_v33  ;;  %v2765_v39 = vpop.f32.mrb[40].mxu0 }
 0x1e1   : > { %2019 = vst.msk [vmem:[%s3461_s9 + $0x88] sm:$0xff] %vm2000_vm6, %v2765_v39  ;;  %v1478_v40 = vpop.f32.mrb[41].mxu0 }
 0x1e2   : > { %v2740_v37 = vpop.f32.mrb[30].mxu1  ;;  %2018 = vst.msk [vmem:[%s3461_s9 + $0x80] sm:$0xff] %vm2000_vm6, %v1478_v40 }
 0x1e3   : > { %2008 = vst.msk [vmem:[%s3461_s9 + $0x38] sm:$0xff] %vm2000_vm6, %v2740_v37  ;;  %v1327_v38 = vpop.f32.mrb[31].mxu1 }
 0x1e4   : > { %2007 = vst.msk [vmem:[%s3461_s9 + $0x30] sm:$0xff] %vm2000_vm6, %v1327_v38  ;;  %v2768_v43 = vpop.f32.mrb[42].mxu0 }
 0x1e5   : > { %2021 = vst.msk [vmem:[%s3461_s9 + $0x98] sm:$0xff] %vm2000_vm6, %v2768_v43  ;;  %v1488_v44 = vpop.f32.mrb[43].mxu0 }
 0x1e6   : > { %v2743_v41 = vpop.f32.mrb[32].mxu1  ;;  %2020 = vst.msk [vmem:[%s3461_s9 + $0x90] sm:$0xff] %vm2000_vm6, %v1488_v44 }
 0x1e7   : > { %2010 = vst.msk [vmem:[%s3461_s9 + $0x48] sm:$0xff] %vm2000_vm6, %v2743_v41  ;;  %v1337_v42 = vpop.f32.mrb[33].mxu1 }
 0x1e8   : > { %2009 = vst.msk [vmem:[%s3461_s9 + $0x40] sm:$0xff] %vm2000_vm6, %v1337_v42  ;;  %v2771_v47 = vpop.f32.mrb[44].mxu0 }
 0x1e9   : > { %2023 = vst.msk [vmem:[%s3461_s9 + $0xa8] sm:$0xff] %vm2000_vm6, %v2771_v47  ;;  %v1498_v49 = vpop.f32.mrb[45].mxu0 }
 0x1ea   : > { %v2746_v45 = vpop.f32.mrb[34].mxu1  ;;  %2022 = vst.msk [vmem:[%s3461_s9 + $0xa0] sm:$0xff] %vm2000_vm6, %v1498_v49 }
 0x1eb   : > { %2013 = vst.msk [vmem:[%s3461_s9 + $0x58] sm:$0x3] %vm2012_vm7, %v2746_v45  ;;  %v1347_v46 = vpop.f32.mrb[35].mxu1 }
 0x1ec   : > { %2011 = vst.msk [vmem:[%s3461_s9 + $0x50] sm:$0xff] %vm2000_vm6, %v1347_v46  ;;  %v2774_v52 = vpop.f32.mrb[46].mxu0 }
 0x1ed   : > { %2025 = vst.msk [vmem:[%s3461_s9 + $0xb8] sm:$0x3] %vm2012_vm7, %v2774_v52  ;;  %v1508_v53 = vpop.f32.mrb[47].mxu0 }
 0x1ee   : > { %v2787_v50 = vpop.f32.mrb[36].mxu1  ;;  %2024 = vst.msk [vmem:[%s3461_s9 + $0xb0] sm:$0xff] %vm2000_vm6, %v1508_v53 }
 0x1ef   : > { %2027 = vst.msk [vmem:[%s3461_s9 + $0xc8] sm:$0xff] %vm2000_vm6, %v2787_v50  ;;  %v1619_v51 = vpop.f32.mrb[37].mxu1 }
 0x1f0   : > { %2026 = vst.msk [vmem:[%s3461_s9 + $0xc0] sm:$0xff] %vm2000_vm6, %v1619_v51  ;;  %v2815_v56 = vpop.f32.mrb[48].mxu0 }
 0x1f1   : > { %2039 = vst.msk [vmem:[%s3461_s9 + $0x128] sm:$0xff] %vm2000_vm6, %v2815_v56  ;;  %v1780_v57 = vpop.f32.mrb[49].mxu0 }
 0x1f2   : > { %v2790_v54 = vpop.f32.mrb[38].mxu1  ;;  %2038 = vst.msk [vmem:[%s3461_s9 + $0x120] sm:$0xff] %vm2000_vm6, %v1780_v57 }
 0x1f3   : > { %2029 = vst.msk [vmem:[%s3461_s9 + $0xd8] sm:$0xff] %vm2000_vm6, %v2790_v54  ;;  %v1629_v55 = vpop.f32.mrb[39].mxu1 }
 0x1f4   : > { %2028 = vst.msk [vmem:[%s3461_s9 + $0xd0] sm:$0xff] %vm2000_vm6, %v1629_v55  ;;  %v2818_v61 = vpop.f32.mrb[50].mxu0 }
 0x1f5   : > { %2041 = vst.msk [vmem:[%s3461_s9 + $0x138] sm:$0xff] %vm2000_vm6, %v2818_v61  ;;  %v1790_v62 = vpop.f32.mrb[51].mxu0 }
 0x1f6   : > { %v2793_v59 = vpop.f32.mrb[40].mxu1  ;;  %2040 = vst.msk [vmem:[%s3461_s9 + $0x130] sm:$0xff] %vm2000_vm6, %v1790_v62 }
 0x1f7   : > { %2031 = vst.msk [vmem:[%s3461_s9 + $0xe8] sm:$0xff] %vm2000_vm6, %v2793_v59  ;;  %v1639_v60 = vpop.f32.mrb[41].mxu1 }
 0x1f8   : > { %2030 = vst.msk [vmem:[%s3461_s9 + $0xe0] sm:$0xff] %vm2000_vm6, %v1639_v60  ;;  %v2821_v48 = vpop.f32.mrb[52].mxu0 }
 0x1f9   : > { %2043 = vst.msk [vmem:[%s3461_s9 + $0x148] sm:$0xff] %vm2000_vm6, %v2821_v48  ;;  %v1800_v1 = vpop.f32.mrb[53].mxu0 }
 0x1fa   : > { %v2796_v63 = vpop.f32.mrb[42].mxu1  ;;  %2042 = vst.msk [vmem:[%s3461_s9 + $0x140] sm:$0xff] %vm2000_vm6, %v1800_v1 }
 0x1fb   : > { %2033 = vst.msk [vmem:[%s3461_s9 + $0xf8] sm:$0xff] %vm2000_vm6, %v2796_v63  ;;  %v1649_v0 = vpop.f32.mrb[43].mxu1 }
 0x1fc   : > { %2032 = vst.msk [vmem:[%s3461_s9 + $0xf0] sm:$0xff] %vm2000_vm6, %v1649_v0  ;;  %v2824_v4 = vpop.f32.mrb[54].mxu0 }
 0x1fd   : > { %2045 = vst.msk [vmem:[%s3461_s9 + $0x158] sm:$0xff] %vm2000_vm6, %v2824_v4  ;;  %v1810_v5 = vpop.f32.mrb[55].mxu0 }
 0x1fe   : > { %v2799_v2 = vpop.f32.mrb[44].mxu1  ;;  %2044 = vst.msk [vmem:[%s3461_s9 + $0x150] sm:$0xff] %vm2000_vm6, %v1810_v5 }
 0x1ff   : > { %2035 = vst.msk [vmem:[%s3461_s9 + $0x108] sm:$0xff] %vm2000_vm6, %v2799_v2  ;;  %v1659_v58 = vpop.f32.mrb[45].mxu1 }
 0x200   : > { %2034 = vst.msk [vmem:[%s3461_s9 + $0x100] sm:$0xff] %vm2000_vm6, %v1659_v58  ;;  %v2827_v3 = vpop.f32.mrb[56].mxu0 }
 0x201   : > { %2047 = vst.msk [vmem:[%s3461_s9 + $0x168] sm:$0xff] %vm2000_vm6, %v2827_v3  ;;  %v1820_v8 = vpop.f32.mrb[57].mxu0 }
 0x202   : > { %v2802_v6 = vpop.f32.mrb[46].mxu1  ;;  %2046 = vst.msk [vmem:[%s3461_s9 + $0x160] sm:$0xff] %vm2000_vm6, %v1820_v8 }
 0x203   : > { %2037 = vst.msk [vmem:[%s3461_s9 + $0x118] sm:$0x3] %vm2012_vm7, %v2802_v6  ;;  %v1669_v7 = vpop.f32.mrb[47].mxu1 }
 0x204   : > { %2036 = vst.msk [vmem:[%s3461_s9 + $0x110] sm:$0xff] %vm2000_vm6, %v1669_v7  ;;  %v2830_v11 = vpop.f32.mrb[58].mxu0 }
 0x205   : > { %2049 = vst.msk [vmem:[%s3461_s9 + $0x178] sm:$0x3] %vm2012_vm7, %v2830_v11  ;;  %v1830_v12 = vpop.f32.mrb[59].mxu0 }
 0x206   : > { %v2843_v9 = vpop.f32.mrb[48].mxu1  ;;  %2048 = vst.msk [vmem:[%s3461_s9 + $0x170] sm:$0xff] %vm2000_vm6, %v1830_v12 }
 0x207   : > { %2051 = vst.msk [vmem:[%s3461_s9 + $0x188] sm:$0xff] %vm2000_vm6, %v2843_v9  ;;  %v1941_v10 = vpop.f32.mrb[49].mxu1 }
 0x208   : > { %2050 = vst.msk [vmem:[%s3461_s9 + $0x180] sm:$0xff] %vm2000_vm6, %v1941_v10 }
 0x20a   : > { %v2846_v13 = vpop.f32.mrb[50].mxu1 }
 0x20b   : > { %2053 = vst.msk [vmem:[%s3461_s9 + $0x198] sm:$0xff] %vm2000_vm6, %v2846_v13  ;;  %v1951_v14 = vpop.f32.mrb[51].mxu1 }
 0x20c   : > { %2052 = vst.msk [vmem:[%s3461_s9 + $0x190] sm:$0xff] %vm2000_vm6, %v1951_v14 }
 0x20e   : > { %v2849_v15 = vpop.f32.mrb[52].mxu1 }
 0x20f   : > { %2055 = vst.msk [vmem:[%s3461_s9 + $0x1a8] sm:$0xff] %vm2000_vm6, %v2849_v15  ;;  %v1961_v16 = vpop.f32.mrb[53].mxu1 }
 0x210   : > { %2054 = vst.msk [vmem:[%s3461_s9 + $0x1a0] sm:$0xff] %vm2000_vm6, %v1961_v16 }
 0x212   : > { %v2852_v17 = vpop.f32.mrb[54].mxu1 }
 0x213   : > { %2057 = vst.msk [vmem:[%s3461_s9 + $0x1b8] sm:$0xff] %vm2000_vm6, %v2852_v17  ;;  %v1971_v18 = vpop.f32.mrb[55].mxu1 }
 0x214   : > { %2056 = vst.msk [vmem:[%s3461_s9 + $0x1b0] sm:$0xff] %vm2000_vm6, %v1971_v18 }
 0x216   : > { %v2855_v19 = vpop.f32.mrb[56].mxu1 }
 0x217   : > { %2059 = vst.msk [vmem:[%s3461_s9 + $0x1c8] sm:$0xff] %vm2000_vm6, %v2855_v19  ;;  %v1981_v20 = vpop.f32.mrb[57].mxu1 }
 0x218   : > { %2058 = vst.msk [vmem:[%s3461_s9 + $0x1c0] sm:$0xff] %vm2000_vm6, %v1981_v20 }
 0x21a   : > { %v2858_v21 = vpop.f32.mrb[58].mxu1 }
 0x21b   : > { %2061 = vst.msk [vmem:[%s3461_s9 + $0x1d8] sm:$0x3] %vm2012_vm7, %v2858_v21  ;;  %v1991_v34 = vpop.f32.mrb[59].mxu1 }
 0x21c   : > { %2060 = vst.msk [vmem:[%s3461_s9 + $0x1d0] sm:$0xff] %vm2000_vm6, %v1991_v34 }
 0x21d PF: > { %s13_s14 = sadd.s32 1, %s3077_s14   ;;  %s3598_s12 = smov %s3073_s13 }
 0x21e   : > { %p10_p5 = scmp.ge.s32.totalorder %s13_s14, 4   ;;  %s3599_s13 = smov %s3601_s15 }
 0x220   :  { %12 = sbr.rel (!%p10_p5) target bundleno = 2 (0x2), region = 65 }

</bundles_post_ra>
